<compile_context>
chip_gen: v6e
topology: v6e:2x2x1
jax: 0.10.0
libtpu: 0.0.40
codegen_flags: <defaults>
</compile_context>

<pallas_src>
import jax
import jax.numpy as jnp
from jax.experimental import pallas as pl
from jax.experimental.pallas import tpu as pltpu


def _residual_block_kernel(x_ref, w1_ref, b1_ref, w2_ref, b2_ref, o_ref):
    x = x_ref[...]                          # (TILE_B, F) float32 residual input
    cdt = w1_ref.dtype                      # matmul operand dtype (bf16 here)
    # fc1 + ReLU  (bf16 operands, f32 accumulation, f32 elementwise)
    h = jnp.dot(x.astype(cdt), w1_ref[...], preferred_element_type=jnp.float32)
    h = jnp.maximum(h + b1_ref[...], 0.0)
    # fc2 + residual add + ReLU
    t = jnp.dot(h.astype(cdt), w2_ref[...], preferred_element_type=jnp.float32)
    o_ref[...] = jnp.maximum(t + b2_ref[...] + x, 0.0)


def _round_up(x, m):
    return (x + m - 1) // m * m


def residual_block_forward(x, params, *, tile_b=512):
    """x: (B, F) float32. Returns (B, F) float32 = relu(fc2(relu(fc1(x))) + x)."""
    B, F = x.shape
    tb = min(tile_b, _round_up(B, 8))       # batch tile, multiple of 8 sublanes
    Bp = _round_up(B, tb)
    xp = jnp.pad(x, ((0, Bp - B), (0, 0))) if Bp != B else x

    out = pl.pallas_call(
        _residual_block_kernel,
        out_shape=jax.ShapeDtypeStruct((Bp, F), jnp.float32),
        grid=(Bp // tb,),
        in_specs=[
            pl.BlockSpec((tb, F), lambda i: (i, 0)),   # x: new batch tile per step
            pl.BlockSpec((F, F), lambda i: (0, 0)),    # w1: resident in VMEM
            pl.BlockSpec((1, F), lambda i: (0, 0)),    # b1: resident
            pl.BlockSpec((F, F), lambda i: (0, 0)),    # w2: resident
            pl.BlockSpec((1, F), lambda i: (0, 0)),    # b2: resident
        ],
        out_specs=pl.BlockSpec((tb, F), lambda i: (i, 0)),
        compiler_params=pltpu.CompilerParams(
            dimension_semantics=("parallel",)),
    )(xp, params["w1"], params["b1"], params["w2"], params["b2"])
    return out[:B]


def init_params(key, input_size, matmul_dtype=jnp.bfloat16):
    """PyTorch-Linear-style init; weights stored (in, out) and cast to the
    matmul operand dtype (bf16), biases kept f32."""
    ks = jax.random.split(key, 4)
    bound = 1.0 / jnp.sqrt(jnp.float32(input_size))

    def unif(k, shape):
        return jax.random.uniform(k, shape, jnp.float32, -bound, bound)

    return {
        "w1": unif(ks[0], (input_size, input_size)).astype(matmul_dtype),
        "b1": unif(ks[1], (1, input_size)),
        "w2": unif(ks[2], (input_size, input_size)).astype(matmul_dtype),
        "b2": unif(ks[3], (1, input_size)),
    }


def reference_forward(x, params):
    """Plain-JAX reference with the same bf16-operand / f32-accumulate math."""
    cdt = params["w1"].dtype
    h = jnp.dot(x.astype(cdt), params["w1"],
                preferred_element_type=jnp.float32) + params["b1"]
    h = jnp.maximum(h, 0.0)
    t = jnp.dot(h.astype(cdt), params["w2"],
                preferred_element_type=jnp.float32) + params["b2"]
    return jnp.maximum(t + x, 0.0)


def reference_forward_f32(x, params):
    """Full-f32 reference (exact PyTorch-module semantics) for a loose check."""
    w1 = params["w1"].astype(jnp.float32)
    w2 = params["w2"].astype(jnp.float32)
    h = jnp.maximum(x @ w1 + params["b1"], 0.0)
    return jnp.maximum(h @ w2 + params["b2"] + x, 0.0)


if __name__ == "__main__":
    BATCH = 100        # deliberately not a tile multiple (exercises pad + slice)
    INPUT_SIZE = 128   # lane-dense feature width
    TILE_B = 32        # small demo tile -> grid = ceil(100/32) = 4 steps

    key = jax.random.PRNGKey(0)
    k_x, k_p = jax.random.split(key)
    x = jax.random.normal(k_x, (BATCH, INPUT_SIZE), jnp.float32)
    params = init_params(k_p, INPUT_SIZE)

    y = residual_block_forward(x, params, tile_b=TILE_B)
    jax.block_until_ready(y)

    assert y.shape == (BATCH, INPUT_SIZE)
    ref = reference_forward(x, params)
    ref_f32 = reference_forward_f32(x, params)
    assert jnp.allclose(y, ref, atol=1e-4, rtol=1e-4), \
        float(jnp.max(jnp.abs(y - ref)))
    assert jnp.allclose(y, ref_f32, atol=5e-2, rtol=5e-2), \
        float(jnp.max(jnp.abs(y - ref_f32)))

    print("KERNEL_OK")
</pallas_src>

<mosaic_0001>
module attributes {stable_mosaic.version = 11 : i64} {
  func.func @_residual_block_kernel(%arg0: i32, %arg1: memref<32x128xf32, #tpu.memory_space<vmem>>, %arg2: memref<128x128xbf16, #tpu.memory_space<vmem>>, %arg3: memref<1x128xf32, #tpu.memory_space<vmem>>, %arg4: memref<128x128xbf16, #tpu.memory_space<vmem>>, %arg5: memref<1x128xf32, #tpu.memory_space<vmem>>, %arg6: memref<32x128xf32, #tpu.memory_space<vmem>>) attributes {dimension_semantics = [#tpu.dimension_semantics<parallel>], iteration_bounds = array<i64: 4>, scalar_prefetch = 0 : i64, scratch_operands = 0 : i64, tpu.core_type = #tpu.core_type<tc>, window_params = [{transform_indices = @transform_0, window_bounds = array<i64: 32, 128>}, {pipeline_mode = #tpu.pipeline_mode<synchronous>, transform_indices = @transform_1, window_bounds = array<i64: 128, 128>}, {pipeline_mode = #tpu.pipeline_mode<synchronous>, transform_indices = @transform_2, window_bounds = array<i64: 1, 128>}, {pipeline_mode = #tpu.pipeline_mode<synchronous>, transform_indices = @transform_3, window_bounds = array<i64: 128, 128>}, {pipeline_mode = #tpu.pipeline_mode<synchronous>, transform_indices = @transform_4, window_bounds = array<i64: 1, 128>}, {transform_indices = @transform_5, window_bounds = array<i64: 32, 128>}]} {
    %c0 = arith.constant 0 : index
    %c0_0 = arith.constant 0 : index
    %0 = vector.load %arg1[%c0, %c0_0] : memref<32x128xf32, #tpu.memory_space<vmem>>, vector<32x128xf32>
    %1 = arith.truncf %0 : vector<32x128xf32> to vector<32x128xbf16>
    %c0_1 = arith.constant 0 : index
    %c0_2 = arith.constant 0 : index
    %2 = vector.load %arg2[%c0_1, %c0_2] : memref<128x128xbf16, #tpu.memory_space<vmem>>, vector<128x128xbf16>
    %cst = arith.constant dense<0.000000e+00> : vector<32x128xf32>
    %3 = tpu.matmul %1, %2, %cst {dimension_numbers = #tpu.dot_dimension_numbers<[1], [0], [0], [1], [0, 0, 1, 1], [], []>} : vector<32x128xbf16>, vector<128x128xbf16>, vector<32x128xf32> -> vector<32x128xf32>
    %c0_3 = arith.constant 0 : index
    %c0_4 = arith.constant 0 : index
    %4 = vector.load %arg3[%c0_3, %c0_4] : memref<1x128xf32, #tpu.memory_space<vmem>>, vector<1x128xf32>
    %5 = vector.broadcast %4 : vector<1x128xf32> to vector<32x128xf32>
    %6 = arith.addf %3, %5 : vector<32x128xf32>
    %cst_5 = arith.constant 0.000000e+00 : f32
    %7 = vector.broadcast %cst_5 : f32 to vector<32x128xf32>
    %8 = arith.maximumf %6, %7 : vector<32x128xf32>
    %9 = arith.truncf %8 : vector<32x128xf32> to vector<32x128xbf16>
    %c0_6 = arith.constant 0 : index
    %c0_7 = arith.constant 0 : index
    %10 = vector.load %arg4[%c0_6, %c0_7] : memref<128x128xbf16, #tpu.memory_space<vmem>>, vector<128x128xbf16>
    %cst_8 = arith.constant dense<0.000000e+00> : vector<32x128xf32>
    %11 = tpu.matmul %9, %10, %cst_8 {dimension_numbers = #tpu.dot_dimension_numbers<[1], [0], [0], [1], [0, 0, 1, 1], [], []>} : vector<32x128xbf16>, vector<128x128xbf16>, vector<32x128xf32> -> vector<32x128xf32>
    %c0_9 = arith.constant 0 : index
    %c0_10 = arith.constant 0 : index
    %12 = vector.load %arg5[%c0_9, %c0_10] : memref<1x128xf32, #tpu.memory_space<vmem>>, vector<1x128xf32>
    %13 = vector.broadcast %12 : vector<1x128xf32> to vector<32x128xf32>
    %14 = arith.addf %11, %13 : vector<32x128xf32>
    %15 = arith.addf %14, %0 : vector<32x128xf32>
    %cst_11 = arith.constant 0.000000e+00 : f32
    %16 = vector.broadcast %cst_11 : f32 to vector<32x128xf32>
    %17 = arith.maximumf %15, %16 : vector<32x128xf32>
    %c0_12 = arith.constant 0 : index
    %c0_13 = arith.constant 0 : index
    %18 = vector.load %arg6[%c0_12, %c0_13] : memref<32x128xf32, #tpu.memory_space<vmem>>, vector<32x128xf32>
    tpu.vector_store %arg6[%c0_12, %c0_13], %17 {strides = array<i32>} : memref<32x128xf32, #tpu.memory_space<vmem>>, vector<32x128xf32>,
    return
  }
  func.func @transform_0(%arg0: i32) -> (i32, i32) {
    %c0_i32 = arith.constant 0 : i32
    %c0_i32_0 = arith.constant 0 : i32
    return %arg0, %c0_i32 : i32, i32
  }
  func.func @transform_1(%arg0: i32) -> (i32, i32) {
    %c0_i32 = arith.constant 0 : i32
    %c0_i32_0 = arith.constant 0 : i32
    %c0_i32_1 = arith.constant 0 : i32
    return %c0_i32, %c0_i32_0 : i32, i32
  }
  func.func @transform_2(%arg0: i32) -> (i32, i32) {
    %c0_i32 = arith.constant 0 : i32
    %c0_i32_0 = arith.constant 0 : i32
    %c0_i32_1 = arith.constant 0 : i32
    return %c0_i32, %c0_i32_0 : i32, i32
  }
  func.func @transform_3(%arg0: i32) -> (i32, i32) {
    %c0_i32 = arith.constant 0 : i32
    %c0_i32_0 = arith.constant 0 : i32
    %c0_i32_1 = arith.constant 0 : i32
    return %c0_i32, %c0_i32_0 : i32, i32
  }
  func.func @transform_4(%arg0: i32) -> (i32, i32) {
    %c0_i32 = arith.constant 0 : i32
    %c0_i32_0 = arith.constant 0 : i32
    %c0_i32_1 = arith.constant 0 : i32
    return %c0_i32, %c0_i32_0 : i32, i32
  }
  func.func @transform_5(%arg0: i32) -> (i32, i32) {
    %c0_i32 = arith.constant 0 : i32
    %c0_i32_0 = arith.constant 0 : i32
    return %arg0, %c0_i32 : i32, i32
  }
}

</mosaic_0001>

<bundles_post_ra>
// kernel: tpu_custom_call.1
= control target key start
LH: loop header
LB: loop body
LE: loop exit
PB: predicated region body
PF: predicated region fallthrough
CT: control target
= control target key end

     0   :  { %10 = vsyncpa [#allocation3], 0  ;;  %s1232_s0 = inlined_call_operand.hbm [shape: f32[128,128], index: 0, kind: input, shape index: {}]   ;;  %s1233_s1 = inlined_call_operand.hbm [shape: bf16[128,128], index: 1, kind: input, shape index: {}]   ;;  %s1234_s2 = inlined_call_operand.vmem [shape: f32[1,128], index: 2, kind: input, shape index: {}]   ;;  %s1235_s3 = inlined_call_operand.hbm [shape: bf16[128,128], index: 3, kind: input, shape index: {}]   ;;  %s1236_s4 = inlined_call_operand.vmem [shape: f32[1,128], index: 4, kind: input, shape index: {}]   ;;  %s1237_s5 = inlined_call_operand.hbm [shape: f32[128,128], index: 5, kind: output, shape index: {}]  }
   0x1   :  { %12 = vsyncpa [#allocation3 + $0x1], 0 }
   0x2   :  { %13 = vsyncpa [#allocation6], 0 }
   0x3   :  { %14 = vsyncpa [#allocation4], 0 }
   0x4   :  { %16 = vsyncpa [#allocation4 + $0x1], 0  ;;  %s1022_s18 = smov 0   ;;  %s1024_s19 = smov 0  }
   0x5   :  { %s1026_s20 = smov 0   ;;  %s1028_s21 = smov 0  }
   0x6 LB: > { %s1043_s22 = sadd.s32 4294967295, %s980_s21   ;;  %s645_s23 = sadd.s32 4294967294, %s980_s21   ;;  %s980_s21 = sphi %s1028_s21, %s1258_s21   ;;  %s976_s20 = sphi %s1026_s20, %s1257_s20   ;;  %s972_s19 = sphi %s1024_s19, %s1256_s19   ;;  %s968_s18 = sphi %s1022_s18, %s1255_s18  }
   0x7   : > { %p42_p0 = scmp.ne.s32.totalorder %s972_s19, %s968_s18  ;;  %p1238_p1 = scmp.eq.s32.totalorder %s1043_s22, 0 }
   0x8   : > { %p156_p3 = scmp.eq.s32.totalorder %s645_s23, 3  ;;  %p646_p5 = scmp.ge.s32.totalorder %s980_s21, 1 }
   0x9   : > { %p1052_p4 = por %p1238_p1, %p42_p0  ;;  %p163_p7 = scmp.lt.s32.totalorder %s980_s21, 5 }
   0xa   : > { %p1057_p6 = por %p156_p3, %p42_p0  ;;  %s982_s27 = smov [#allocation5]  }
   0xb   : > { %s1242_s24 = scalar_select %p1052_p4, 1, 0 }
   0xc   : > { %s1243_s25 = scalar_select %p1057_p6, 1, 0 }
   0xd   : > { %p1062_p8 = pnand %p646_p5, %p163_p7  ;;  %s175_s28 = sshll.u32 %s982_s27, 4  ;;  %s176_s28 = int_to_ptr.vmem [resolvable:$true] %s175_s28 }
   0xe   : > { %s983_s30 = smov [#allocation7]   ;;  %s843_s7 = scalar_lea.vmem %s176_s28, 1024 }
   0xf   : > { %s1244_s26 = scalar_select %p1062_p8, 1, 0 }
  0x10   : > { %p755_p9 = pneg %p1062_p8  ;;  %s191_s6 = sshll.u32 %s983_s30, 4  ;;  %s192_s6 = int_to_ptr.vmem [resolvable:$true] %s191_s6 }
  0x11   : > { %p844_p12 = scmp.ne.s32.totalorder %s176_s28, %s843_s7  ;;  %p851_p3 = scmp.lt.s32.totalorder %s176_s28, %s176_s28 }
  0x12   : > { %p1070_p10 = pnand %p755_p9, %p1238_p1  ;;  %p852_p5 = scmp.lt.s32.totalorder %s843_s7, %s843_s7 }
  0x14   : > { %p834_p11 = pneg %p1070_p10  ;;  %p853_p7 = por %p852_p5, %p851_p3 }
  0x16   : > { %p846_p13 = pnand %p844_p12, %p834_p11 }
  0x18   : > { %p847_p0 = pneg %p846_p13 }
  0x1a   : > { %p854_p9 = pnand %p853_p7, %p847_p0 }
  0x1c   : > { %857 = shalt.err (!%p854_p9)
}
  0x1d   : > { %s984_s8 = smov 64   ;;  %s985_s9 = smov 4  }
  0x1e   : > { %758 = dma.hbm_to_vmem [thread:$0]  (!%p1070_p10), %s1233_s1, 1024, %s176_s28, [#allocation6], %s984_s8, %s984_s8, %s985_s9  }
  0x1f   : > { %s869_s12 = scalar_lea.vmem %s192_s6, 1024  ;;  %p877_p2 = scmp.lt.s32.totalorder %s192_s6, %s192_s6 }
  0x20   : > { %p870_p1 = scmp.ne.s32.totalorder %s192_s6, %s869_s12  ;;  %p878_p6 = scmp.lt.s32.totalorder %s869_s12, %s869_s12 }
  0x22   : > { %p872_p12 = pnand %p870_p1, %p834_p11  ;;  %p879_p3 = por %p878_p6, %p877_p2 }
  0x24   : > { %p873_p13 = pneg %p872_p12 }
  0x26   : > { %p880_p0 = pnand %p879_p3, %p873_p13 }
  0x28   : > { %883 = shalt.err (!%p880_p0)
}
  0x29   : > { %761 = dma.hbm_to_vmem [thread:$0]  (!%p1070_p10), %s1235_s3, 1024, %s192_s6, [#allocation6], %s984_s8, %s984_s8, %s985_s9  }
  0x2a   : > { %s1093_s15 = sadd.s32 1, %s980_s21   ;;  %s29_s16 = sadd.s32 1, %s976_s20 }
  0x2b   : > { %s26_s17 = ssub.s32 %s980_s21, %s1093_s15  ;;  %p36_p1 = scmp.ne.s32.totalorder %s976_s20, %s972_s19 }
  0x2c   : > { %p27_p2 = scmp.eq.s32.totalorder %s26_s17, 0  ;;  %p37_p6 = scmp.eq.s32.totalorder %s980_s21, 0 }
  0x2d   : > { %p1246_p11 = scmp.eq.s32.totalorder %s1043_s22, 3  ;;  %p772_p7 = scmp.lt.s32.totalorder %s980_s21, 4 }
  0x2e   : > { %s1109_s27 = scalar_select %p27_p2, %s976_s20, %s29_s16  }
  0x2f   : > { %p1103_p5 = por %p1246_p11, %p36_p1  ;;  %p38_p9 = por %p37_p6, %p36_p1 }
  0x30   : > { %s208_s28 = sand.u32 1, %s976_s20   ;;  %s681_s30 = sshll.u32 %s980_s21, 9 }
  0x31   : > { %s1247_s23 = scalar_select %p1103_p5, 1, 0 }
  0x32   : > { %s650_s29 = sshll.u32 %s208_s28, 5  ;;  %s1116_s8 = scalar_lea.hbm %s1232_s0, %s681_s30 }
  0x33   : > { %s212_s9 = scalar_lea.vmem [#allocation2], %s650_s29  ;;  %p1120_p10 = pnand %p772_p7, %p38_p9 }
  0x34   : > { %s219_s10 = sshll.u32 %s212_s9, 4  ;;  %s1124_s12 = scalar_lea.sflag [#allocation3], %s208_s28  ;;  %s1118_s10 = int_to_ptr.vmem [resolvable:$true] %s219_s10 }
  0x35   : > { %s884_s13 = scalar_lea.hbm %s1116_s8, 512  ;;  %p886_p13 = pneg %p1120_p10 }
  0x36   : > { %p885_p12 = scmp.ne.s32.totalorder %s1116_s8, %s884_s13  ;;  %s889_s17 = scalar_lea.hbm %s1232_s0, 2048 }
  0x37   : > { %p890_p1 = scmp.lt.s32.totalorder %s1116_s8, %s1232_s0  ;;  %p891_p2 = scmp.lt.s32.totalorder %s889_s17, %s884_s13 }
  0x38   : > { %p887_p3 = pnand %p886_p13, %p885_p12 }
  0x39   : > { %p892_p6 = por %p891_p2, %p890_p1 }
  0x3a   : > { %p888_p0 = pneg %p887_p3 }
  0x3c   : > { %p893_p11 = pnand %p892_p6, %p888_p0 }
  0x3e   : > { %896 = shalt.err (!%p893_p11)
}
  0x3f   : > { %s897_s28 = scalar_lea.vmem %s1118_s10, 512  ;;  %s986_s6 = smov [#allocation2]  }
  0x40   : > { %p898_p7 = scmp.ne.s32.totalorder %s1118_s10, %s897_s28  ;;  %s902_s7 = sshll.u32 %s986_s6, 4  ;;  %s903_s7 = int_to_ptr.vmem [resolvable:$false] %s902_s7 }
  0x41   : > { %s904_s9 = scalar_lea.vmem %s903_s7, 1024  ;;  %p905_p3 = scmp.lt.s32.totalorder %s1118_s10, %s903_s7 }
  0x42   : > { %p900_p9 = pnand %p898_p7, %p886_p13  ;;  %p906_p5 = scmp.lt.s32.totalorder %s904_s9, %s897_s28 }
  0x44   : > { %p901_p12 = pneg %p900_p9  ;;  %p907_p4 = por %p906_p5, %p905_p3 }
  0x46   : > { %p908_p8 = pnand %p907_p4, %p901_p12 }
  0x48   : > { %911 = shalt.err (!%p908_p8)
}
  0x49   : > { %s987_s13 = smov 128   ;;  %s988_s14 = smov 8  }
  0x4a   : > { %765 = dma.hbm_to_vmem [thread:$0]  (!%p1120_p10), %s1116_s8, 512, %s1118_s10, %s1124_s12, %s987_s13, %s987_s13, %s988_s14  }
  0x4b   : > { %p1249_p13 = scmp.ne.s32.totalorder %s1244_s26, 0 }
  0x4c   : > { %s1148_s16 = sand.u32 (!%p1249_p13), 1, %s972_s19   ;;  %p1250_p4 = scmp.ne.s32.totalorder (!%p1249_p13), %s1242_s24, 0 }
  0x4d   : > { %231 = sbr.rel (%p1249_p13) target bundleno = 544 (0x220), region = 40  ;;  %s654_s17 = sshll.u32 (!%p1249_p13), %s1148_s16, 5 }
  0x4e   : > { %s234_s29 = scalar_lea.sflag (!%p1249_p13), [#allocation3], %s1148_s16  ;;  %s1154_s30 = scalar_lea.vmem (!%p1249_p13), [#allocation2], %s654_s17 }
  0x52   : > { %955 = dma.done.wait (%p1250_p4), %s234_s29, 512  }
  0x53   : > { %957 = vsyncadd (%p1250_p4), %s234_s29, 4294966784  ;;  %p1251_p8 = scmp.eq.s32.totalorder %s1043_s22, 0 }
  0x55   : > { %959 = dma.done.wait (%p1251_p8), [#allocation6], 2048   ;;  %p1252_p5 = pmov %p1251_p8 }
  0x56   : > { %v816_v0 = vld [vmem:[#allocation5 + $0x38] sm:$0xff]   ;;  %v817_v1 = vld [vmem:[#allocation5 + $0x30] sm:$0xff]   ;;  %v818_v2 = vld [vmem:[#allocation5 + $0x28] sm:$0xff]   ;;  %s271_s11 = scalar_lea.vmem [#allocation8], %s654_s17  ;;  %s682_s28 = sshll.u32 %s1043_s22, 9 }
  0x57   : > { %961 = vsyncadd (%p1252_p5), [#allocation6], 4294965248  ;;  %703 = vmatprep.subr.bf16.mxu0 %v816_v0  ;;  %v819_v3 = vld [vmem:[#allocation5 + $0x20] sm:$0xff]   ;;  %v1168_v5 = vld [vmem:[%s1154_s30 + $0x8] sm:$0xff]  ;;  %s553_s12 = sshll.u32 %s271_s11, 4  ;;  %s1190_s9 = scalar_lea.hbm %s1237_s5, %s682_s28  ;;  %s1184_s12 = int_to_ptr.vmem [resolvable:$true] %s553_s12 }
  0x58   : > { %704 = vmatpush3.bf16.msra.mxu0 %v816_v0  ;;  %v1165_v4 = vld [vmem:[%s1154_s30] sm:$0xff]  ;;  %v824_v7 = vld [vmem:[#allocation7 + $0x38] sm:$0xff]   ;;  %v825_v8 = vld [vmem:[#allocation7 + $0x30] sm:$0xff]   ;;  %s540_s13 = scalar_lea.sflag [#allocation4], %s1148_s16  ;;  %s912_s14 = scalar_lea.vmem %s1184_s12, 512 }
  0x59   : > { %705 = vmatprep.subr.bf16.mxu0 %v817_v1  ;;  %v279_v6 = vpack.c.bf16 %v1168_v5, %v1165_v4  ;;  %v820_v9 = vld [vmem:[#allocation5 + $0x18] sm:$0xff]   ;;  %723 = vmatprep.subr.bf16.mxu1 %v824_v7  ;;  %v826_v10 = vld [vmem:[#allocation7 + $0x28] sm:$0xff]   ;;  %v821_v11 = vld [vmem:[#allocation5 + $0x10] sm:$0xff]   ;;  %p913_p10 = scmp.ne.s32.totalorder %s1184_s12, %s912_s14  ;;  %p1253_p0 = scmp.ne.s32.totalorder %s1247_s23, 0 }
  0x5a   : > { %724 = vmatpush3.bf16.msra.mxu1 %v824_v7  ;;  %v827_v12 = vld [vmem:[#allocation7 + $0x20] sm:$0xff]   ;;  %v822_v13 = vld [vmem:[#allocation5 + $0x8] sm:$0xff]   ;;  %v828_v14 = vld [vmem:[#allocation7 + $0x18] sm:$0xff]   ;;  %s989_s22 = smov [#allocation8]  }
  0x5b   : > { %719 = vmatprep.mubr.bf16.mxu0 %v279_v6  ;;  %725 = vmatprep.subr.bf16.mxu1 %v825_v8  ;;  %v823_v15 = vld [vmem:[#allocation5] sm:$0xff]   ;;  %v277_v16 = vld [vmem:[%s1154_s30 + $0x10] sm:$0xff]  ;;  %v278_v17 = vld [vmem:[%s1154_s30 + $0x18] sm:$0xff]  ;;  %p914_p1 = pnand %p913_p10, %p1253_p0  ;;  %s916_s17 = sshll.u32 %s989_s22, 4  ;;  %s917_s17 = int_to_ptr.vmem [resolvable:$false] %s916_s17 }
  0x5c   : > { %706 = vmatpush3.bf16.msra.mxu0 %v817_v1  ;;  %v280_v18 = vpack.c.bf16 %v278_v17, %v277_v16  ;;  %v829_v19 = vld [vmem:[#allocation7 + $0x10] sm:$0xff]   ;;  %v830_v20 = vld [vmem:[#allocation7 + $0x8] sm:$0xff]   ;;  %v831_v21 = vld [vmem:[#allocation7] sm:$0xff]   ;;  %s918_s29 = scalar_lea.vmem %s917_s17, 1024  ;;  %p919_p6 = scmp.lt.s32.totalorder %s1184_s12, %s917_s17 }
  0x5d   : > { %707 = vmatprep.subr.bf16.mxu0 %v818_v2  ;;  %v658_v24 = vld [vmem:[%s1234_s2] ss:$0 sm:$0xff]  ;;  %p915_p2 = pneg %p914_p1  ;;  %p920_p11 = scmp.lt.s32.totalorder %s918_s29, %s912_s14 }
  0x5e   : > { %726 = vmatpush3.bf16.msra.mxu1 %v825_v8  ;;  %v667_v37 = vld [vmem:[%s1236_s4] ss:$0 sm:$0xff] }
  0x5f   : > { %727 = vmatprep.subr.bf16.mxu1 %v826_v10  ;;  %p921_p7 = por %p920_p11, %p919_p6 }
  0x60   : > { %708 = vmatpush3.bf16.msra.mxu0 %v818_v2 }
  0x61   : > { %709 = vmatprep.subr.bf16.mxu0 %v819_v3  ;;  %p922_p9 = pnand %p921_p7, %p915_p2 }
  0x62   : > { %728 = vmatpush3.bf16.msra.mxu1 %v826_v10 }
  0x63   : > { %729 = vmatprep.subr.bf16.mxu1 %v827_v12 }
  0x64   : > { %710 = vmatpush3.bf16.msra.mxu0 %v819_v3 }
  0x65   : > { %711 = vmatprep.subr.bf16.mxu0 %v820_v9 }
  0x66   : > { %730 = vmatpush3.bf16.msra.mxu1 %v827_v12 }
  0x67   : > { %731 = vmatprep.subr.bf16.mxu1 %v828_v14 }
  0x68   : > { %712 = vmatpush3.bf16.msra.mxu0 %v820_v9 }
  0x69   : > { %713 = vmatprep.subr.bf16.mxu0 %v821_v11 }
  0x6a   : > { %732 = vmatpush3.bf16.msra.mxu1 %v828_v14 }
  0x6b   : > { %733 = vmatprep.subr.bf16.mxu1 %v829_v19 }
  0x6c   : > { %714 = vmatpush3.bf16.msra.mxu0 %v821_v11 }
  0x6d   : > { %715 = vmatprep.subr.bf16.mxu0 %v822_v13 }
  0x6e   : > { %734 = vmatpush3.bf16.msra.mxu1 %v829_v19 }
  0x6f   : > { %735 = vmatprep.subr.bf16.mxu1 %v830_v20 }
  0x70   : > { %716 = vmatpush3.bf16.msra.mxu0 %v822_v13 }
  0x71   : > { %717 = vmatprep.subr.bf16.mxu0 %v823_v15 }
  0x72   : > { %736 = vmatpush3.bf16.msra.mxu1 %v830_v20 }
  0x73   : > { %737 = vmatprep.subr.bf16.mxu1 %v831_v21 }
  0x74   : > { %718 = vmatpush3.bf16.msra.mxu0 %v823_v15 }
  0x76   : > { %738 = vmatpush3.bf16.msra.mxu1 %v831_v21 }
  0x77   : > { %720 = vmatmul.mubr.bf16.vlgmr.msra.gmra.mxu0 %v280_v18 }
 0x137   : > { %v721_v22 = vpop.f32.mrf.mxu0 }
 0x138   : > { %v395_v28 = vadd.f32 %v721_v22, %v658_v24 }
 0x139   : > { %v386_v23 = vpop.f32.mrf.mxu0 }
 0x13a   : > { %v387_v26 = vadd.f32 %v658_v24, %v386_v23  ;;  %v403_v34 = vmax.f32 %v395_v28, 0.0 }
 0x13b   : > { %v722_v25 = vpop.f32.mrf.mxu0 }
 0x13c   : > { %v398_v27 = vadd.f32 %v722_v25, %v658_v24  ;;  %v401_v32 = vmax.f32 %v387_v26, 0.0 }
 0x13d   : > { %v389_v29 = vpop.f32.mrf.mxu0 }
 0x13e   : > { %v390_v30 = vadd.f32 %v658_v24, %v389_v29  ;;  %v404_v31 = vmax.f32 %v398_v27, 0.0 }
 0x140   : > { %v402_v33 = vmax.f32 %v390_v30, 0.0  ;;  %v406_v36 = vpack.c.bf16 %v404_v31, %v403_v34 }
 0x142   : > { %v405_v35 = vpack.c.bf16 %v402_v33, %v401_v32 }
 0x144   : > { %739 = vmatprep.mubr.bf16.mxu1 %v405_v35 }
 0x145   : > { %740 = vmatmul.mubr.bf16.vlgmr.msra.gmra.mxu1 %v406_v36 }
 0x205   : > { %v741_v38 = vpop.f32.mrf.mxu1 }
 0x206   : > { %v521_v39 = vadd.f32 %v741_v38, %v667_v37 }
 0x207   : > { %v512_v40 = vpop.f32.mrf.mxu1 }
 0x208   : > { %v529_v41 = vadd.f32 %v521_v39, %v277_v16  ;;  %v513_v42 = vadd.f32 %v667_v37, %v512_v40 }
 0x209   : > { %v742_v43 = vpop.f32.mrf.mxu1 }
 0x20a   : > { %v533_v44 = vmax.f32 %v529_v41, 0.0  ;;  %v527_v45 = vadd.f32 %v513_v42, %v1165_v4  ;;  %v524_v46 = vadd.f32 %v742_v43, %v667_v37 }
 0x20b   : > { %v515_v47 = vpop.f32.mrf.mxu1 }
 0x20c   : > { %537 = vst [vmem:[%s271_s11 + $0x10] sm:$0xff] %v533_v44  ;;  %v531_v48 = vmax.f32 %v527_v45, 0.0  ;;  %v530_v49 = vadd.f32 %v524_v46, %v278_v17  ;;  %v516_v50 = vadd.f32 %v667_v37, %v515_v47 }
 0x20e   : > { %535 = vst [vmem:[%s271_s11] sm:$0xff] %v531_v48  ;;  %v534_v51 = vmax.f32 %v530_v49, 0.0  ;;  %v528_v52 = vadd.f32 %v516_v50, %v1168_v5 }
 0x210   : > { %538 = vst [vmem:[%s271_s11 + $0x18] sm:$0xff] %v534_v51  ;;  %v532_v53 = vmax.f32 %v528_v52, 0.0 }
 0x212   : > { %536 = vst [vmem:[%s271_s11 + $0x8] sm:$0xff] %v532_v53 }
 0x213   : > { %925 = shalt.err (!%p922_p9)
}
 0x214   : > { %s926_s30 = scalar_lea.hbm %s1190_s9, 512  ;;  %s930_s8 = scalar_lea.hbm %s1237_s5, 2048 }
 0x215   : > { %p927_p12 = scmp.ne.s32.totalorder %s1190_s9, %s926_s30  ;;  %p931_p4 = scmp.lt.s32.totalorder %s1190_s9, %s1237_s5 }
 0x216   : > { %p932_p8 = scmp.lt.s32.totalorder %s930_s8, %s926_s30 }
 0x217   : > { %p928_p3 = pnand %p927_p12, %p1253_p0 }
 0x218   : > { %p933_p5 = por %p932_p8, %p931_p4 }
 0x219   : > { %p929_p13 = pneg %p928_p3 }
 0x21b   : > { %p934_p10 = pnand %p933_p5, %p929_p13 }
 0x21d   : > { %937 = shalt.err (!%p934_p10)
}
 0x21e   : > { %s990_s28 = smov 128   ;;  %s991_s6 = smov 8  }
 0x21f   : > { %753 = dma.vmem_to_hbm [thread:$0]  (%p1253_p0), %s1184_s12, 512, %s1190_s9, %s540_s13, %s990_s28, %s990_s28, %s991_s6  }
 0x220 PF: > { %p775_p1 = scmp.ge.s32.totalorder %s980_s21, 2  ;;  %s568_s7 = sand.u32 1, %s968_s18  }
 0x221   : > { %p1254_p2 = scmp.ne.s32.totalorder %s1243_s25, 0  ;;  %s569_s14 = scalar_lea.sflag [#allocation4], %s568_s7 }
 0x223   : > { %p767_p6 = pnand %p775_p1, %p1254_p2 }
 0x225   : > { %p768_p11 = pneg %p767_p6 }
 0x227   : > { %963 = dma.done.wait (%p768_p11), %s569_s14, 512  }
 0x228   : > { %965 = vsyncadd (%p768_p11), %s569_s14, 4294966784  ;;  %p19_p7 = scmp.ge.s32.totalorder %s1093_s15, 6   ;;  %s1255_s18 = smov %s972_s19 }
 0x229   : > { %s1256_s19 = smov %s976_s20  ;;  %s1257_s20 = smov %s1109_s27 }
 0x22a   : > { %s1258_s21 = smov %s1093_s15  ;;  %21 = sbr.rel (!%p19_p7) target bundleno = 6 (0x6), region = 93 }
 0x22f   :  { %574 = vsyncpa [#allocation3], 1 }
 0x230   :  { %576 = vsyncpa [#allocation3 + $0x1], 1 }
 0x231   :  { %577 = vsyncpa [#allocation6], 1 }
 0x232   :  { %578 = vsyncpa [#allocation4], 1 }
 0x233   :  { %580 = vsyncpa [#allocation4 + $0x1], 1 }

</bundles_post_ra>
